<compile_context>
chip_gen: v7x
topology: tpu7x:2x2x1
jax: 0.10.0
libtpu: 0.0.40
codegen_flags: <defaults>
</compile_context>

<pallas_src>
import functools

import jax
import jax.numpy as jnp
from jax.experimental import pallas as pl
from jax.experimental.pallas import tpu as pltpu

LANE = 128  # vreg lane width; output feature dims are padded to this.


def _round_up(x, m):
    return ((x + m - 1) // m) * m


def _pick_row_tile(n, max_tile=256):
    """Largest divisor of n that is a multiple of 8 and <= max_tile (or n itself)."""
    if n <= max_tile:
        return n
    t = (max_tile // 8) * 8
    while t >= 8:
        if n % t == 0:
            return t
        t -= 8
    return n


def _pick_k_tile(n, max_tile=512):
    """Largest divisor of n that is a multiple of 128 and <= max_tile (or n itself)."""
    if n <= max_tile:
        return n
    t = (max_tile // LANE) * LANE
    while t >= LANE:
        if n % t == 0:
            return t
        t -= LANE
    return n


# ---------------------------------------------------------------------------
# Kernel 1: feature transform  msg = (input_weight * H) @ W   (computed ONCE)
# ---------------------------------------------------------------------------
def _feature_kernel(h_ref, w_ref, wmat_ref, o_ref):
    # h_ref: (tn, d_in), w_ref: (tn, 1), wmat_ref: (d_in, d_pad), o_ref: (tn, d_pad)
    weighted = w_ref[...] * h_ref[...]                      # VPU broadcast over lanes
    o_ref[...] = jnp.dot(weighted, wmat_ref[...],
                         preferred_element_type=jnp.float32).astype(o_ref.dtype)


def _feature_transform(H, input_weight, W_pad, *, row_tile):
    N, d_in = H.shape
    d_pad = W_pad.shape[1]
    tn = row_tile
    grid = (N // tn,)
    return pl.pallas_call(
        _feature_kernel,
        out_shape=jax.ShapeDtypeStruct((N, d_pad), jnp.float32),
        grid=grid,
        in_specs=[
            pl.BlockSpec((tn, d_in), lambda i: (i, 0)),     # H row-tile
            pl.BlockSpec((tn, 1), lambda i: (i, 0)),        # input_weight row-tile
            pl.BlockSpec((d_in, d_pad), lambda i: (0, 0)),  # W (resident, same block)
        ],
        out_specs=pl.BlockSpec((tn, d_pad), lambda i: (i, 0)),
        compiler_params=pltpu.CompilerParams(dimension_semantics=("parallel",)),
        cost_estimate=pl.CostEstimate(
            flops=2 * N * d_in * d_pad + N * d_in,
            transcendentals=0,
            bytes_accessed=4 * (N * d_in + N + d_in * d_pad + N * d_pad)),
    )(H, input_weight, W_pad)


# ---------------------------------------------------------------------------
# Kernel 2: aggregation  out = act( A @ msg + b )  with K-tiled reduction
# ---------------------------------------------------------------------------
def _aggregate_kernel(a_ref, msg_ref, b_ref, o_ref, acc_ref, *,
                      activation, num_valid):
    # a_ref: (tn, tk), msg_ref: (tk, d_pad), b_ref: (1, d_pad)
    # o_ref: (tn, d_pad), acc_ref: (tn, d_pad) f32 scratch (persistent across k)
    k = pl.program_id(1)

    @pl.when(k == 0)
    def _():
        acc_ref[...] = jnp.zeros_like(acc_ref)

    acc_ref[...] += jnp.dot(a_ref[...], msg_ref[...],
                            preferred_element_type=jnp.float32)

    @pl.when(k == pl.num_programs(1) - 1)
    def _():
        out = acc_ref[...] + b_ref[...]
        if activation == "relu":
            # Padded lanes are exactly 0 (zero W/b columns), relu keeps them 0.
            out = jnp.maximum(out, 0.0)
        elif activation == "log_softmax":
            # Mask padded lanes out of the row reduction (dim=1 log_softmax).
            col = jax.lax.broadcasted_iota(jnp.int32, out.shape, 1)
            valid = col < num_valid
            neg = jnp.finfo(jnp.float32).min
            masked = jnp.where(valid, out, neg)
            m = jnp.max(masked, axis=1, keepdims=True)
            shifted = masked - m
            e = jnp.where(valid, jnp.exp(shifted), 0.0)
            lse = jnp.log(jnp.sum(e, axis=1, keepdims=True))
            out = shifted - lse
        # activation == "none": identity
        o_ref[...] = out.astype(o_ref.dtype)


def _aggregate(structure, msg, b_pad, *, activation, num_valid,
               row_tile, k_tile, mxu_dtype=jnp.float32):
    N = structure.shape[0]
    d_pad = msg.shape[1]
    tn, tk = row_tile, k_tile
    grid = (N // tn, N // tk)

    # Optional bf16 cast of the MXU inputs (structure stream dominates HBM
    # traffic); accumulation stays f32. Default f32 keeps 1e-4 accuracy.
    a_in = structure.astype(mxu_dtype)
    msg_in = msg.astype(mxu_dtype)

    kernel = functools.partial(_aggregate_kernel,
                               activation=activation, num_valid=num_valid)
    trans = N * d_pad if activation == "log_softmax" else 0

    return pl.pallas_call(
        kernel,
        out_shape=jax.ShapeDtypeStruct((N, d_pad), jnp.float32),
        grid=grid,
        in_specs=[
            pl.BlockSpec((tn, tk), lambda i, k: (i, k)),      # A tile (streamed)
            pl.BlockSpec((tk, d_pad), lambda i, k: (k, 0)),   # msg k-tile
            pl.BlockSpec((1, d_pad), lambda i, k: (0, 0)),    # bias (resident)
        ],
        out_specs=pl.BlockSpec((tn, d_pad), lambda i, k: (i, 0)),
        scratch_shapes=[pltpu.VMEM((tn, d_pad), jnp.float32)],
        compiler_params=pltpu.CompilerParams(
            dimension_semantics=("parallel", "arbitrary")),
        cost_estimate=pl.CostEstimate(
            flops=2 * N * N * d_pad,
            transcendentals=trans,
            bytes_accessed=a_in.dtype.itemsize * N * N
            + msg_in.dtype.itemsize * N * d_pad
            + 4 * (N * d_pad + d_pad)),
    )(a_in, msg_in, b_pad)


# ---------------------------------------------------------------------------
# Full HyperMSG forward pass (inference mode)
# ---------------------------------------------------------------------------
def hypermsg_forward(structure, H, input_weight, params, *,
                     max_row_tile=256, max_k_tile=512, mxu_dtype=jnp.float32):
    N = H.shape[0]
    tn = _pick_row_tile(N, max_row_tile)
    tk = _pick_k_tile(N, max_k_tile)

    hidden = params["W1"].shape[1]
    c = params["W2"].shape[1]
    hp = _round_up(hidden, LANE)
    cp = _round_up(c, LANE)

    # Lane-dense (128-wide) zero-padded weights/biases.
    W1p = jnp.zeros((params["W1"].shape[0], hp), jnp.float32).at[:, :hidden].set(params["W1"])
    b1p = jnp.zeros((1, hp), jnp.float32).at[:, :hidden].set(params["b1"])
    W2p = jnp.zeros((hp, cp), jnp.float32).at[:hidden, :c].set(params["W2"])
    b2p = jnp.zeros((1, cp), jnp.float32).at[:, :c].set(params["b2"])

    # Layer 1: msg1 = (w*H) @ W1 computed once, then A @ msg1 + b1, relu.
    msg1 = _feature_transform(H, input_weight, W1p, row_tile=tn)
    h1 = _aggregate(structure, msg1, b1p, activation="relu", num_valid=hidden,
                    row_tile=tn, k_tile=tk, mxu_dtype=mxu_dtype)

    # TODO(synk): F.dropout implemented only for eval/inference (identity);
    # training-mode stochastic dropout is omitted.

    # Layer 2: h1's padded columns are exactly zero and hit zero-padded W2 rows,
    # so the padding is semantically inert. log_softmax masks padded lanes.
    msg2 = _feature_transform(h1, input_weight, W2p, row_tile=tn)
    out_pad = _aggregate(structure, msg2, b2p, activation="log_softmax",
                         num_valid=c, row_tile=tn, k_tile=tk, mxu_dtype=mxu_dtype)

    # TODO(synk): for very small graphs both layers could be fused into one
    # pallas_call (h1 kept in VMEM scratch); kept as separate calls for clarity.
    return out_pad[:, :c]


# Pure-JAX reference for validation.
def hypermsg_forward_ref(structure, H, input_weight, params):
    h1 = structure @ (input_weight * (H @ params["W1"])) + params["b1"][None, :]
    h1 = jnp.maximum(h1, 0.0)
    h2 = structure @ (input_weight * (h1 @ params["W2"])) + params["b2"][None, :]
    return jax.nn.log_softmax(h2, axis=1)


def init_params(key, d, hidden, c):
    """Deterministic init mirroring torch reset_parameters: U(-std, std),
    std = 1/sqrt(out_dim)."""
    k1, k2, k3, k4 = jax.random.split(key, 4)
    std1 = 1.0 / jnp.sqrt(hidden)
    std2 = 1.0 / jnp.sqrt(c)
    return {
        "W1": jax.random.uniform(k1, (d, hidden), jnp.float32, -std1, std1),
        "b1": jax.random.uniform(k2, (hidden,), jnp.float32, -std1, std1),
        "W2": jax.random.uniform(k3, (hidden, c), jnp.float32, -std2, std2),
        "b2": jax.random.uniform(k4, (c,), jnp.float32, -std2, std2),
    }


if __name__ == "__main__":
    # Small synthetic hypergraph: N nodes, E hyperedges, d input features,
    # hidden = 16 (fixed by the module), c classes.
    N, E, d, hidden, c = 64, 24, 32, 16, 8

    key = jax.random.PRNGKey(0)
    k_inc, k_feat, k_par = jax.random.split(key, 3)

    # Random incidence matrix -> dense symmetric normalized structure matrix.
    incidence = (jax.random.uniform(k_inc, (N, E)) < 0.2).astype(jnp.float32)
    A = incidence @ incidence.T + jnp.eye(N, dtype=jnp.float32)
    deg = jnp.sum(A, axis=1)
    d_inv_sqrt = 1.0 / jnp.sqrt(deg)
    structure = d_inv_sqrt[:, None] * A * d_inv_sqrt[None, :]      # (N, N)

    # Node features and per-node input weights (degree-derived, positive).
    H = jax.random.normal(k_feat, (N, d), jnp.float32)             # (N, d)
    input_weight = (1.0 + jnp.log1p(deg))[:, None]                 # (N, 1)
    input_weight = input_weight / jnp.mean(input_weight)

    params = init_params(k_par, d, hidden, c)

    out = hypermsg_forward(structure, H, input_weight, params)
    out = jax.block_until_ready(out)

    ref = hypermsg_forward_ref(structure, H, input_weight, params)
    assert out.shape == (N, c)
    max_err = float(jnp.max(jnp.abs(out - ref)))
    assert jnp.allclose(out, ref, atol=1e-4, rtol=1e-4), max_err

    print("KERNEL_OK")
</pallas_src>

<mosaic_0001>
module attributes {stable_mosaic.version = 11 : i64} {
  func.func @_feature_kernel(%arg0: i32, %arg1: memref<64x32xf32, #tpu.memory_space<vmem>>, %arg2: memref<64x1xf32, #tpu.memory_space<vmem>>, %arg3: memref<32x128xf32, #tpu.memory_space<vmem>>, %arg4: memref<64x128xf32, #tpu.memory_space<vmem>>) attributes {dimension_semantics = [#tpu.dimension_semantics<parallel>], iteration_bounds = array<i64: 1>, scalar_prefetch = 0 : i64, scratch_operands = 0 : i64, tpu.core_type = #tpu.core_type<tc>, window_params = [{transform_indices = @transform_0, window_bounds = array<i64: 64, 32>}, {transform_indices = @transform_1, window_bounds = array<i64: 64, 1>}, {pipeline_mode = #tpu.pipeline_mode<synchronous>, transform_indices = @transform_2, window_bounds = array<i64: 32, 128>}, {transform_indices = @transform_3, window_bounds = array<i64: 64, 128>}]} {
    %c0 = arith.constant 0 : index
    %c0_0 = arith.constant 0 : index
    %0 = vector.load %arg2[%c0, %c0_0] : memref<64x1xf32, #tpu.memory_space<vmem>>, vector<64x1xf32>
    %c0_1 = arith.constant 0 : index
    %c0_2 = arith.constant 0 : index
    %1 = vector.load %arg1[%c0_1, %c0_2] : memref<64x32xf32, #tpu.memory_space<vmem>>, vector<64x32xf32>
    %2 = vector.broadcast %0 : vector<64x1xf32> to vector<64x32xf32>
    %3 = arith.mulf %2, %1 : vector<64x32xf32>
    %c0_3 = arith.constant 0 : index
    %c0_4 = arith.constant 0 : index
    %4 = vector.load %arg3[%c0_3, %c0_4] : memref<32x128xf32, #tpu.memory_space<vmem>>, vector<32x128xf32>
    %cst = arith.constant dense<0.000000e+00> : vector<64x128xf32>
    %5 = tpu.matmul %3, %4, %cst {dimension_numbers = #tpu.dot_dimension_numbers<[1], [0], [0], [1], [0, 0, 1, 1], [], []>} : vector<64x32xf32>, vector<32x128xf32>, vector<64x128xf32> -> vector<64x128xf32>
    %c0_5 = arith.constant 0 : index
    %c0_6 = arith.constant 0 : index
    %6 = vector.load %arg4[%c0_5, %c0_6] : memref<64x128xf32, #tpu.memory_space<vmem>>, vector<64x128xf32>
    tpu.vector_store %arg4[%c0_5, %c0_6], %5 {strides = array<i32>} : memref<64x128xf32, #tpu.memory_space<vmem>>, vector<64x128xf32>,
    return
  }
  func.func @transform_0(%arg0: i32) -> (i32, i32) {
    %c0_i32 = arith.constant 0 : i32
    %c0_i32_0 = arith.constant 0 : i32
    return %arg0, %c0_i32 : i32, i32
  }
  func.func @transform_1(%arg0: i32) -> (i32, i32) {
    %c0_i32 = arith.constant 0 : i32
    %c0_i32_0 = arith.constant 0 : i32
    return %arg0, %c0_i32 : i32, i32
  }
  func.func @transform_2(%arg0: i32) -> (i32, i32) {
    %c0_i32 = arith.constant 0 : i32
    %c0_i32_0 = arith.constant 0 : i32
    %c0_i32_1 = arith.constant 0 : i32
    return %c0_i32, %c0_i32_0 : i32, i32
  }
  func.func @transform_3(%arg0: i32) -> (i32, i32) {
    %c0_i32 = arith.constant 0 : i32
    %c0_i32_0 = arith.constant 0 : i32
    return %arg0, %c0_i32 : i32, i32
  }
}

</mosaic_0001>

<bundles_post_ra>
// kernel: tpu_custom_call.1
= control target key start
LH: loop header
LB: loop body
LE: loop exit
PB: predicated region body
PF: predicated region fallthrough
CT: control target
= control target key end

     0   :  { %v319_v2 = vmov 0   ;;  %s423_s0 = inlined_call_operand.vmem [shape: f32[64,32], index: 0, kind: input, shape index: {}]   ;;  %s424_s1 = inlined_call_operand.vmem [shape: f32[64,1], index: 1, kind: input, shape index: {}]   ;;  %s425_s2 = inlined_call_operand.vmem [shape: f32[32,128], index: 2, kind: input, shape index: {}]   ;;  %s426_s3 = inlined_call_operand.hbm [shape: f32[64,128], index: 3, kind: output, shape index: {}]  }
   0x1   :  { %v16_v0 = vld [vmem:[%s424_s1 + $0x8] sm:$0xff]  ;;  %v15_v1 = vld [vmem:[%s424_s1] sm:$0xff]  ;;  %294 = vset.pattern.permute.xlu1 %v319_v2  ;;  %293 = vset.pattern.permute.xlu0 %v319_v2  ;;  %v81_v7 = vld [vmem:[%s425_s2 + $0x10] sm:$0xff] }
   0x2   :  { %38 = vperm.xlu1 %294, %v16_v0   ;;  %33 = vperm.xlu0 %293, %v15_v1   ;;  %v20_v3 = vld [vmem:[%s424_s1 + $0x28] sm:$0xff]  ;;  %v19_v4 = vld [vmem:[%s424_s1 + $0x20] sm:$0xff]  ;;  %v82_v8 = vld [vmem:[%s425_s2 + $0x18] sm:$0xff] }
   0x3   :  { %v79_v5 = vld [vmem:[%s425_s2] sm:$0xff]  ;;  %v80_v6 = vld [vmem:[%s425_s2 + $0x8] sm:$0xff]  ;;  %v281_v10 = vpack.c.bf16 %v82_v8, %v81_v7 }
   0x4   :  { %v277_v9 = vpack.c.bf16 %v80_v6, %v79_v5 }
   0x5   :  { %8 = vsyncpa [#allocation3], 0  ;;  %v21_v11 = vld [vmem:[%s424_s1 + $0x30] sm:$0xff]  ;;  %v22_v13 = vld [vmem:[%s424_s1 + $0x38] sm:$0xff]  ;;  %vm83_vm0 = vcmask 261120  }
   0x6   :  { %58 = vperm.xlu1 %294, %v20_v3   ;;  %53 = vperm.xlu0 %293, %v19_v4   ;;  %v17_v12 = vld [vmem:[%s424_s1 + $0x10] sm:$0xff]  ;;  %v18_v14 = vld [vmem:[%s424_s1 + $0x18] sm:$0xff]  ;;  %v24_v15 = vld [vmem:[%s423_s0 + $0x8] sm:$0xff] }
   0x7   :  { %278 = vmatprep.subr.bf16.mxu0 %v277_v9  ;;  %285 = vmatprep.subr.bf16.mxu1 %v277_v9  ;;  %v23_v16 = vld [vmem:[%s423_s0] sm:$0xff]  ;;  %v28_v21 = vld [vmem:[%s423_s0 + $0x28] sm:$0xff]  ;;  %v29_v27 = vld [vmem:[%s423_s0 + $0x30] sm:$0xff] }
   0x8   :  { %280 = vmatpush3.bf16.msra.mxu0 %v277_v9  ;;  %287 = vmatpush3.bf16.msra.mxu1 %v277_v9  ;;  %v27_v22 = vld [vmem:[%s423_s0 + $0x20] sm:$0xff]  ;;  %v25_v28 = vld [vmem:[%s423_s0 + $0x10] sm:$0xff]  ;;  %v30_v33 = vld [vmem:[%s423_s0 + $0x38] sm:$0xff] }
   0x9   :  { %282 = vmatprep.subr.bf16.mxu0 %v281_v10  ;;  %286 = vmatprep.subr.bf16.mxu1 %v281_v10  ;;  %v26_v34 = vld [vmem:[%s423_s0 + $0x18] sm:$0xff]  ;;  %s320_s0 = smov [#allocation2]  }
   0xa   :  { %63 = vperm.xlu1 %294, %v21_v11   ;;  %43 = vperm.xlu0 %293, %v17_v12   ;;  %s226_s23 = sshll.u32 %s320_s0, 4  ;;  %s227_s23 = int_to_ptr.vmem [resolvable:$true] %s226_s23 }
   0xb   :  { %s295_s24 = scalar_lea.vmem %s227_s23, 1024  ;;  %p300_p1 = scmp.lt.s32.totalorder %s227_s23, %s227_s23 }
   0xc   :  { %284 = vmatpush3.bf16.msra.mxu0 %v281_v10  ;;  %288 = vmatpush3.bf16.msra.mxu1 %v281_v10  ;;  %p296_p0 = scmp.ne.s32.totalorder %s227_s23, %s295_s24  ;;  %p301_p2 = scmp.lt.s32.totalorder %s295_s24, %s295_s24 }
   0xe   :  { %68 = vperm.xlu1 %294, %v22_v13   ;;  %48 = vperm.xlu0 %293, %v18_v14   ;;  %p302_p3 = por %p301_p2, %p300_p1 }
  0x10   :  { %p303_p4 = pnand %p302_p3, %p296_p0 }
  0x81   :  { %v39_v17 = vpop.permute.xlu1 %38  ;;  %v34_v18 = vpop.permute.xlu0 %33 }
  0x82   :  { %v72_v19 = vmul.f32 %v39_v17, %v24_v15  ;;  %v71_v20 = vmul.f32 %v34_v18, %v23_v16 }
  0x84   :  { %265 = vmatprep.mubr.msk.f32.mxu0 %vm83_vm0, %v71_v20 }
  0x85   :  { %v59_v23 = vpop.permute.xlu1 %58  ;;  %266 = vmatmul.mubr.msk.f32.vlgmr.msra.gmra.mrb[0].mxu0 %vm83_vm0, %v72_v19  ;;  %v54_v24 = vpop.permute.xlu0 %53 }
  0x86   :  { %v76_v25 = vmul.f32 %v59_v23, %v28_v21  ;;  %v75_v26 = vmul.f32 %v54_v24, %v27_v22 }
  0x88   :  { %271 = vmatprep.mubr.msk.f32.mxu1 %vm83_vm0, %v75_v26 }
  0x89   :  { %v64_v29 = vpop.permute.xlu1 %63  ;;  %272 = vmatmul.mubr.msk.f32.vlgmr.msra.gmra.mrb[0].mxu1 %vm83_vm0, %v76_v25  ;;  %v44_v30 = vpop.permute.xlu0 %43 }
  0x8a   :  { %v77_v31 = vmul.f32 %v64_v29, %v29_v27  ;;  %v73_v32 = vmul.f32 %v44_v30, %v25_v28 }
  0x8c   :  { %268 = vmatprep.mubr.msk.f32.mxu0 %vm83_vm0, %v73_v32  ;;  %274 = vmatprep.mubr.msk.f32.mxu1 %vm83_vm0, %v77_v31 }
  0x8d   :  { %v69_v35 = vpop.permute.xlu1 %68  ;;  %v49_v36 = vpop.permute.xlu0 %48 }
  0x8e   :  { %v78_v37 = vmul.f32 %v69_v35, %v30_v33  ;;  %v74_v38 = vmul.f32 %v49_v36, %v26_v34 }
  0x90   :  { %269 = vmatmul.mubr.msk.f32.gmra.mrb[2].mxu0 %vm83_vm0, %v74_v38  ;;  %275 = vmatmul.mubr.msk.f32.gmra.mrb[2].mxu1 %vm83_vm0, %v78_v37 }
 0x158   :  { %v267_v39 = vpop.f32.mrb[0].mxu0 }
 0x159   :  { %214 = vst [vmem:[#allocation2 + $0x8] sm:$0xff] %v267_v39  ;;  %v174_v40 = vpop.f32.mrb[1].mxu0 }
 0x15a   :  { %213 = vst [vmem:[#allocation2] sm:$0xff] %v174_v40 }
 0x15c   :  { %v273_v41 = vpop.f32.mrb[0].mxu1 }
 0x15d   :  { %218 = vst [vmem:[#allocation2 + $0x28] sm:$0xff] %v273_v41  ;;  %v194_v42 = vpop.f32.mrb[1].mxu1 }
 0x15e   :  { %217 = vst [vmem:[#allocation2 + $0x20] sm:$0xff] %v194_v42 }
 0x163   :  { %v270_v43 = vpop.f32.mrb[2].mxu0  ;;  %v276_v44 = vpop.f32.mrb[2].mxu1 }
 0x164   :  { %216 = vst [vmem:[#allocation2 + $0x18] sm:$0xff] %v270_v43  ;;  %220 = vst [vmem:[#allocation2 + $0x38] sm:$0xff] %v276_v44  ;;  %v184_v45 = vpop.f32.mrb[3].mxu0  ;;  %v204_v46 = vpop.f32.mrb[3].mxu1 }
 0x165   :  { %215 = vst [vmem:[#allocation2 + $0x10] sm:$0xff] %v184_v45  ;;  %219 = vst [vmem:[#allocation2 + $0x30] sm:$0xff] %v204_v46 }
 0x166   :  { %306 = shalt.err (!%p303_p4)
}
 0x167   :  { %s307_s27 = scalar_lea.hbm %s426_s3, 1024 }
 0x168   :  { %p308_p5 = scmp.ne.s32.totalorder %s426_s3, %s307_s27  ;;  %p311_p6 = scmp.lt.u32.totalorder %s307_s27, %s426_s3 }
 0x16a   :  { %p313_p7 = pnand %p311_p6, %p308_p5 }
 0x16c   :  { %316 = shalt.err (!%p313_p7)
}
 0x16d   :  { %s321_s2 = smov 128   ;;  %s322_s5 = smov 8  }
 0x16e   :  { %232 = dma.vmem_to_hbm [thread:$0]  %s227_s23, 1024, %s426_s3, [#allocation3], %s321_s2, %s321_s2, %s322_s5  }
 0x16f   :  { %317 = dma.done.wait [#allocation3], 1024  }
 0x170   :  { %318 = vsyncadd [#allocation3], 4294966272 }
 0x171   :  { %236 = vsyncpa [#allocation3], 1 }

</bundles_post_ra>
